<compile_context>
chip_gen: v6e
topology: v6e:2x2x1
jax: 0.10.0
libtpu: 0.0.40
codegen_flags: <defaults>
</compile_context>

<pallas_src>
import functools

import jax
import jax.numpy as jnp
from jax import lax
from jax.experimental import pallas as pl
from jax.experimental.pallas import tpu as pltpu


# ----------------------------- small helpers -----------------------------

def _round_up(n, m):
    return -(-n // m) * m


def _divisor_at_most(n, cap):
    cap = max(1, min(cap, n))
    for d in range(cap, 0, -1):
        if n % d == 0:
            return d
    return 1


def _m_tile(m, cap):
    """Largest multiple-of-8 divisor of m that is <= cap (m is a multiple of 8)."""
    cap = min(cap, m)
    if cap >= m:
        return m
    for d in range(cap - cap % 8, 7, -8):
        if m % d == 0:
            return d
    return 8


def _pad_gate_cols(w, H, Hp):
    """(rows, 4H) -> (rows, 4Hp): each gate block placed at stride Hp, zeros pad."""
    rows = w.shape[0]
    out = jnp.zeros((rows, 4 * Hp), w.dtype)
    for g in range(4):
        out = out.at[:, g * Hp:g * Hp + H].set(w[:, g * H:(g + 1) * H])
    return out


# ----------------------------- Pallas kernels -----------------------------

def _proj_kernel(x_ref, wih_ref, b_ref, g_ref):
    # One lane-dense MXU matmul over a (Mt, I) row slab: bf16 in, f32 out.
    g_ref[...] = (jnp.dot(x_ref[...], wih_ref[...],
                          preferred_element_type=jnp.float32)
                  + b_ref[...])


def _recurrent_kernel(gx_ref, whh_ref, h0_ref, c0_ref,
                      y_ref, hn_ref, cn_ref,
                      h_sc, c_sc, *, hidden, chunk):
    s = pl.program_id(0)

    # Load initial state into persistent f32 VMEM scratch on the first chunk.
    @pl.when(s == 0)
    def _():
        h_sc[...] = h0_ref[...].astype(jnp.float32)
        c_sc[...] = c0_ref[...].astype(jnp.float32)

    w_hh = whh_ref[...]            # (Hp, 4Hp) bf16, resident across the grid
    H = hidden

    def step(tt, carry):
        h, c = carry               # f32 (Bp, Hp)
        # Only the recurrent matmul stays in the loop (bf16 MXU, f32 acc);
        # the input projection was hoisted into gx.
        gates = gx_ref[tt] + jnp.dot(h.astype(w_hh.dtype), w_hh,
                                     preferred_element_type=jnp.float32)
        # Lane-aligned gate slices (Hp is a multiple of 128).
        i_g = jax.nn.sigmoid(gates[:, 0 * H:1 * H])
        f_g = jax.nn.sigmoid(gates[:, 1 * H:2 * H])
        g_g = jnp.tanh(gates[:, 2 * H:3 * H])
        o_g = jax.nn.sigmoid(gates[:, 3 * H:4 * H])
        c_new = f_g * c + i_g * g_g
        h_new = o_g * jnp.tanh(c_new)
        y_ref[tt] = h_new.astype(y_ref.dtype)   # lane-dense (Bp, Hp) store
        return h_new, c_new

    h, c = lax.fori_loop(0, chunk, step, (h_sc[...], c_sc[...]),
                         unroll=chunk <= 16)
    h_sc[...] = h
    c_sc[...] = c

    # Emit final state on the last grid iteration of the chunked time axis.
    @pl.when(s == pl.num_programs(0) - 1)
    def _():
        hn_ref[...] = h.astype(hn_ref.dtype)
        cn_ref[...] = c.astype(cn_ref.dtype)


def lstm_pallas(x_pad, w_ih_pad, w_hh_pad, bias_pad, h0_pad, c0_pad,
                *, time_chunk=16, m_tile=512):
    """x_pad: (T, Bp, I) f32; w_ih_pad: (I, 4Hp) bf16; w_hh_pad: (Hp, 4Hp) bf16;
    bias_pad: (1, 4Hp) f32; h0_pad/c0_pad: (Bp, Hp) f32.
    Returns (y: (T, Bp, Hp), h_n: (Bp, Hp), c_n: (Bp, Hp))."""
    T, Bp, I = x_pad.shape
    Hp = h0_pad.shape[-1]
    fourH = 4 * Hp

    # ---------- Phase 1: hoisted input projection (one big matmul) ----------
    M = T * Bp
    x2 = x_pad.reshape(M, I).astype(jnp.bfloat16)
    mt = _m_tile(M, m_tile)
    gx = pl.pallas_call(
        _proj_kernel,
        out_shape=jax.ShapeDtypeStruct((M, fourH), jnp.float32),
        grid_spec=pltpu.PrefetchScalarGridSpec(
            num_scalar_prefetch=0,
            grid=(M // mt,),
            in_specs=[
                pl.BlockSpec((mt, I), lambda m: (m, 0)),        # x rows
                pl.BlockSpec((I, fourH), lambda m: (0, 0)),     # W_ih^T (bf16)
                pl.BlockSpec((1, fourH), lambda m: (0, 0)),     # bias (f32)
            ],
            out_specs=pl.BlockSpec((mt, fourH), lambda m: (m, 0)),
        ),
        compiler_params=pltpu.CompilerParams(
            dimension_semantics=("parallel",)),
    )(x2, w_ih_pad, bias_pad)
    gx = gx.reshape(T, Bp, fourH)

    # ---------- Phase 2: sequential recurrence over chunked time axis ----------
    tc = _divisor_at_most(T, time_chunk)      # tc always divides T (no tail)
    kernel = functools.partial(_recurrent_kernel, hidden=Hp, chunk=tc)

    out_shapes = (
        jax.ShapeDtypeStruct((T, Bp, Hp), x_pad.dtype),
        jax.ShapeDtypeStruct((Bp, Hp), x_pad.dtype),
        jax.ShapeDtypeStruct((Bp, Hp), x_pad.dtype),
    )
    grid_spec = pltpu.PrefetchScalarGridSpec(
        num_scalar_prefetch=0,
        grid=(T // tc,),
        in_specs=[
            pl.BlockSpec((tc, Bp, fourH), lambda s: (s, 0, 0)),  # G_x chunk
            pl.BlockSpec((Hp, fourH), lambda s: (0, 0)),         # W_hh^T (bf16)
            pl.BlockSpec((Bp, Hp), lambda s: (0, 0)),            # h0
            pl.BlockSpec((Bp, Hp), lambda s: (0, 0)),            # c0
        ],
        out_specs=[
            pl.BlockSpec((tc, Bp, Hp), lambda s: (s, 0, 0)),     # y chunk
            pl.BlockSpec((Bp, Hp), lambda s: (0, 0)),            # h_n
            pl.BlockSpec((Bp, Hp), lambda s: (0, 0)),            # c_n
        ],
        scratch_shapes=[
            pltpu.VMEM((Bp, Hp), jnp.float32),                   # h state
            pltpu.VMEM((Bp, Hp), jnp.float32),                   # c state
        ],
    )
    # TODO(synk): for large B on v7x add a leading batch-tile grid axis with
    # dimension_semantics=("parallel", "arbitrary") so both TensorCores run,
    # and single-buffer the resident W_hh block to halve its VMEM footprint.
    return pl.pallas_call(
        kernel,
        out_shape=out_shapes,
        grid_spec=grid_spec,
        compiler_params=pltpu.CompilerParams(
            dimension_semantics=("arbitrary",)),   # time is sequential
    )(gx, w_hh_pad, h0_pad, c0_pad)


# ----------------------------- module wrapper -----------------------------

class RnnWrapperPallas:
    """Pallas analogue of RnnWrapper(nn.LSTM(input_size, hidden_size))."""

    def __init__(self, input_size, hidden_size, key):
        self.input_size = input_size
        self.hidden_size = hidden_size
        H = hidden_size
        Hp = _round_up(H, 128)
        self.hidden_pad = Hp

        k = 1.0 / jnp.sqrt(jnp.float32(H))
        k1, k2, k3, k4 = jax.random.split(key, 4)
        # PyTorch stores W_ih: (4H, I), W_hh: (4H, H); keep transposed copies
        # so the kernel issues lane-dense (.., 4H) matmuls. Gate order [i,f,g,o].
        self.w_ih_t = jax.random.uniform(k1, (input_size, 4 * H),
                                         jnp.float32, -k, k)
        self.w_hh_t = jax.random.uniform(k2, (H, 4 * H), jnp.float32, -k, k)
        b_ih = jax.random.uniform(k3, (4 * H,), jnp.float32, -k, k)
        b_hh = jax.random.uniform(k4, (4 * H,), jnp.float32, -k, k)
        self.bias = (b_ih + b_hh).reshape(1, 4 * H)

        # Kernel-side copies: gate blocks placed at stride Hp (128-aligned),
        # zero padding, bf16 for the MXU; bias stays f32 (added post-matmul).
        self.w_ih_pad = _pad_gate_cols(self.w_ih_t, H, Hp).astype(jnp.bfloat16)
        w_hh_p = jnp.zeros((Hp, 4 * Hp), jnp.float32)
        w_hh_p = w_hh_p.at[:H].set(_pad_gate_cols(self.w_hh_t, H, Hp))
        self.w_hh_pad = w_hh_p.astype(jnp.bfloat16)
        self.bias_pad = _pad_gate_cols(self.bias, H, Hp)

    def __call__(self, x, h=None, c=None):
        # flatten_parameters() is a cuDNN memory-layout hint; no-op on TPU.
        T, B, _ = x.shape
        H, Hp = self.hidden_size, self.hidden_pad
        Bp = _round_up(B, 8)
        x_p = jnp.pad(x, ((0, 0), (0, Bp - B), (0, 0)))

        stateless = h is None or c is None
        if stateless:
            h0 = jnp.zeros((Bp, Hp), x.dtype)
            c0 = jnp.zeros((Bp, Hp), x.dtype)
        else:
            h0 = jnp.pad(h.reshape(B, H), ((0, Bp - B), (0, Hp - H)))
            c0 = jnp.pad(c.reshape(B, H), ((0, Bp - B), (0, Hp - H)))

        y_p, hn_p, cn_p = lstm_pallas(x_p, self.w_ih_pad, self.w_hh_pad,
                                      self.bias_pad, h0, c0)
        y = y_p[:, :B, :H]
        if stateless:
            return y                                        # rnn(x)[0]
        return y, (hn_p[None, :B, :H], cn_p[None, :B, :H])  # rnn(x, (h, c))


# ----------------------------- pure-JAX reference -----------------------------

def _lstm_reference(x, w_ih_t, w_hh_t, bias, h0, c0):
    """lax.scan reference matching the kernel numerics (bf16-rounded MXU
    inputs, f32 accumulation / gate math), torch gate order [i, f, g, o]."""
    H = h0.shape[-1]
    wih = w_ih_t.astype(jnp.bfloat16).astype(jnp.float32)
    whh = w_hh_t.astype(jnp.bfloat16).astype(jnp.float32)

    def step(carry, x_t):
        h, c = carry
        xb = x_t.astype(jnp.bfloat16).astype(jnp.float32)
        hb = h.astype(jnp.bfloat16).astype(jnp.float32)
        gates = (jnp.dot(xb, wih, precision=lax.Precision.HIGHEST)
                 + jnp.dot(hb, whh, precision=lax.Precision.HIGHEST) + bias)
        i = jax.nn.sigmoid(gates[:, 0 * H:1 * H])
        f = jax.nn.sigmoid(gates[:, 1 * H:2 * H])
        g = jnp.tanh(gates[:, 2 * H:3 * H])
        o = jax.nn.sigmoid(gates[:, 3 * H:4 * H])
        c_new = f * c + i * g
        h_new = o * jnp.tanh(c_new)
        return (h_new, c_new), h_new

    (hn, cn), ys = lax.scan(step, (h0, c0), x)
    return ys, hn, cn


if __name__ == "__main__":
    T, B, I, H = 16, 8, 16, 32
    key = jax.random.PRNGKey(0)
    kp, kx, kh, kc = jax.random.split(key, 4)

    model = RnnWrapperPallas(I, H, kp)
    x = jax.random.normal(kx, (T, B, I), jnp.float32)
    h0 = jax.random.normal(kh, (1, B, H), jnp.float32)
    c0 = jax.random.normal(kc, (1, B, H), jnp.float32)

    # Branch 1: no state -> output only (rnn(x)[0]).
    y = model(x)
    y = jax.block_until_ready(y)

    # Branch 2: with (h, c) -> (output, (h_n, c_n)).
    y2, (hn, cn) = model(x, h0, c0)
    jax.block_until_ready((y2, hn, cn))

    # Correctness check against pure-JAX reference (same bf16 rounding path).
    y_ref, hn_ref, cn_ref = _lstm_reference(
        x, model.w_ih_t, model.w_hh_t, model.bias,
        h0.reshape(B, H), c0.reshape(B, H))
    y0_ref, _, _ = _lstm_reference(
        x, model.w_ih_t, model.w_hh_t, model.bias,
        jnp.zeros((B, H), jnp.float32), jnp.zeros((B, H), jnp.float32))

    assert jnp.allclose(y, y0_ref, atol=2e-3, rtol=2e-3)
    assert jnp.allclose(y2, y_ref, atol=2e-3, rtol=2e-3)
    assert jnp.allclose(hn[0], hn_ref, atol=2e-3, rtol=2e-3)
    assert jnp.allclose(cn[0], cn_ref, atol=2e-3, rtol=2e-3)

    print("KERNEL_OK")
</pallas_src>

<mosaic_0001>
module attributes {stable_mosaic.version = 11 : i64} {
  func.func @_proj_kernel(%arg0: i32, %arg1: memref<128x16xbf16, #tpu.memory_space<vmem>>, %arg2: memref<16x512xbf16, #tpu.memory_space<vmem>>, %arg3: memref<1x512xf32, #tpu.memory_space<vmem>>, %arg4: memref<128x512xf32, #tpu.memory_space<vmem>>) attributes {dimension_semantics = [#tpu.dimension_semantics<parallel>], iteration_bounds = array<i64: 1>, scalar_prefetch = 0 : i64, scratch_operands = 0 : i64, tpu.core_type = #tpu.core_type<tc>, window_params = [{transform_indices = @transform_0, window_bounds = array<i64: 128, 16>}, {pipeline_mode = #tpu.pipeline_mode<synchronous>, transform_indices = @transform_1, window_bounds = array<i64: 16, 512>}, {pipeline_mode = #tpu.pipeline_mode<synchronous>, transform_indices = @transform_2, window_bounds = array<i64: 1, 512>}, {transform_indices = @transform_3, window_bounds = array<i64: 128, 512>}]} {
    %c0 = arith.constant 0 : index
    %c0_0 = arith.constant 0 : index
    %0 = vector.load %arg1[%c0, %c0_0] : memref<128x16xbf16, #tpu.memory_space<vmem>>, vector<128x16xbf16>
    %c0_1 = arith.constant 0 : index
    %c0_2 = arith.constant 0 : index
    %1 = vector.load %arg2[%c0_1, %c0_2] : memref<16x512xbf16, #tpu.memory_space<vmem>>, vector<16x512xbf16>
    %cst = arith.constant dense<0.000000e+00> : vector<128x512xf32>
    %2 = tpu.matmul %0, %1, %cst {dimension_numbers = #tpu.dot_dimension_numbers<[1], [0], [0], [1], [0, 0, 1, 1], [], []>} : vector<128x16xbf16>, vector<16x512xbf16>, vector<128x512xf32> -> vector<128x512xf32>
    %c0_3 = arith.constant 0 : index
    %c0_4 = arith.constant 0 : index
    %3 = vector.load %arg3[%c0_3, %c0_4] : memref<1x512xf32, #tpu.memory_space<vmem>>, vector<1x512xf32>
    %4 = vector.broadcast %3 : vector<1x512xf32> to vector<128x512xf32>
    %5 = arith.addf %2, %4 : vector<128x512xf32>
    %c0_5 = arith.constant 0 : index
    %c0_6 = arith.constant 0 : index
    %6 = vector.load %arg4[%c0_5, %c0_6] : memref<128x512xf32, #tpu.memory_space<vmem>>, vector<128x512xf32>
    tpu.vector_store %arg4[%c0_5, %c0_6], %5 {strides = array<i32>} : memref<128x512xf32, #tpu.memory_space<vmem>>, vector<128x512xf32>,
    return
  }
  func.func @transform_0(%arg0: i32) -> (i32, i32) {
    %c0_i32 = arith.constant 0 : i32
    %c0_i32_0 = arith.constant 0 : i32
    return %arg0, %c0_i32 : i32, i32
  }
  func.func @transform_1(%arg0: i32) -> (i32, i32) {
    %c0_i32 = arith.constant 0 : i32
    %c0_i32_0 = arith.constant 0 : i32
    %c0_i32_1 = arith.constant 0 : i32
    return %c0_i32, %c0_i32_0 : i32, i32
  }
  func.func @transform_2(%arg0: i32) -> (i32, i32) {
    %c0_i32 = arith.constant 0 : i32
    %c0_i32_0 = arith.constant 0 : i32
    %c0_i32_1 = arith.constant 0 : i32
    return %c0_i32, %c0_i32_0 : i32, i32
  }
  func.func @transform_3(%arg0: i32) -> (i32, i32) {
    %c0_i32 = arith.constant 0 : i32
    %c0_i32_0 = arith.constant 0 : i32
    return %arg0, %c0_i32 : i32, i32
  }
}

</mosaic_0001>

<bundles_post_ra>
// kernel: tpu_custom_call.1
= control target key start
LH: loop header
LB: loop body
LE: loop exit
PB: predicated region body
PF: predicated region fallthrough
CT: control target
= control target key end

     0   :  { %v517_v2 = vmov 0   ;;  %vm118_vm0 = vcmask 130048   ;;  %s671_s0 = inlined_call_operand.vmem [shape: bf16[128,16], index: 0, kind: input, shape index: {}]   ;;  %s672_s1 = inlined_call_operand.vmem [shape: bf16[16,512], index: 1, kind: input, shape index: {}]   ;;  %s673_s2 = inlined_call_operand.vmem [shape: f32[1,512], index: 2, kind: input, shape index: {}]   ;;  %s674_s3 = inlined_call_operand.hbm [shape: f32[128,512], index: 3, kind: output, shape index: {}]  }
   0x1   :  { %v481_v0 = vld [vmem:[%s672_s1 + $0x4] ss:$16 sps:$4 sm:$0xff]   ;;  %v483_v1 = vld [vmem:[%s672_s1 + $0xc] ss:$16 sps:$4 sm:$0xff]   ;;  %175 = vmatprep.mubr.bf16.mxu0 %v517_v2  ;;  %288 = vmatprep.mubr.bf16.mxu1 %v517_v2  ;;  %v485_v3 = vld [vmem:[%s672_s1] ss:$16 sps:$4 sm:$0xff]  }
   0x2   :  { %157 = vmatprep.subr.bf16.mxu0 %v481_v0  ;;  %v486_v4 = vld [vmem:[%s672_s1 + $0x8] ss:$16 sps:$4 sm:$0xff]   ;;  %270 = vmatprep.subr.bf16.mxu1 %v483_v1  ;;  %v487_v5 = vld [vmem:[%s671_s0] sm:$0xff]  }
   0x3   :  { %158 = vmatpush1.bf16.msra.mxu0 %v485_v3  ;;  %271 = vmatpush1.bf16.msra.mxu1 %v486_v4  ;;  %v488_v6 = vld [vmem:[%s671_s0 + $0x8] sm:$0xff]  }
   0x6   :  { %461 = vmatmul.mubr.msk.bf16.vlgmr.msra.gmra.mxu0 %vm118_vm0, %v487_v5  ;;  %469 = vmatmul.mubr.msk.bf16.vlgmr.msra.gmra.mxu1 %vm118_vm0, %v487_v5 }
   0x7   :  { %185 = vmatprep.mubr.bf16.mxu0 %v517_v2  ;;  %298 = vmatprep.mubr.bf16.mxu1 %v517_v2 }
   0x8   :  { %8 = vsyncpa [#allocation3], 0  ;;  %v489_v7 = vld [vmem:[%s671_s0 + $0x10] sm:$0xff]   ;;  %v490_v8 = vld [vmem:[%s671_s0 + $0x18] sm:$0xff]   ;;  %v38_v13 = vlaneseq }
   0x9   :  { %v491_v9 = vld [vmem:[%s671_s0 + $0x20] sm:$0xff]   ;;  %v492_v10 = vld [vmem:[%s671_s0 + $0x28] sm:$0xff]   ;;  %v493_v11 = vld [vmem:[%s671_s0 + $0x30] sm:$0xff]  }
   0xa   :  { %v494_v12 = vld [vmem:[%s671_s0 + $0x38] sm:$0xff]   ;;  %v39_v14 = vshrl.u32 %v38_v13, 7  ;;  %v36_v17 = vld [vmem:[%s673_s2] sm:$0xf]  ;;  %s518_s0 = smov [#allocation2]  }
   0xb   :  { %s438_s2 = sshll.u32 %s518_s0, 4  ;;  %s439_s2 = int_to_ptr.vmem [resolvable:$true] %s438_s2 }
   0xc   :  { %v40_v15 = vsub.s32 0, %v39_v14  ;;  %v48_v16 = vsub.s32 2, %v39_v14  ;;  %v44_v18 = vsub.s32 1, %v39_v14  ;;  %v52_v19 = vsub.s32 3, %v39_v14  ;;  %s495_s10 = scalar_lea.vmem %s439_s2, 8192  ;;  %p500_p1 = scmp.lt.s32.totalorder %s439_s2, %s439_s2 }
   0xd   :  { %p496_p0 = scmp.ne.s32.totalorder %s439_s2, %s495_s10  ;;  %p501_p2 = scmp.lt.s32.totalorder %s495_s10, %s495_s10 }
   0xe   :  { %462 = vmatmul.mubr.msk.bf16.gmra.mxu0 %vm118_vm0, %v488_v6  ;;  %470 = vmatmul.mubr.msk.bf16.gmra.mxu1 %vm118_vm0, %v488_v6  ;;  %v596_v20 = vrot.slane %v36_v17, %v40_v15  ;;  %v598_v21 = vrot.slane %v36_v17, %v48_v16  ;;  %v600_v22 = vrot.slane %v36_v17, %v44_v18 }
   0xf   :  { %195 = vmatprep.mubr.bf16.mxu0 %v517_v2  ;;  %308 = vmatprep.mubr.bf16.mxu1 %v517_v2  ;;  %v602_v23 = vrot.slane %v36_v17, %v52_v19  ;;  %p502_p3 = por %p501_p2, %p500_p1 }
  0x11   :  { %p503_p4 = pnand %p502_p3, %p496_p0 }
  0x16   :  { %463 = vmatmul.mubr.msk.bf16.gmra.mxu0 %vm118_vm0, %v489_v7  ;;  %471 = vmatmul.mubr.msk.bf16.gmra.mxu1 %vm118_vm0, %v489_v7 }
  0x17   :  { %205 = vmatprep.mubr.bf16.mxu0 %v517_v2  ;;  %318 = vmatprep.mubr.bf16.mxu1 %v517_v2 }
  0x1e   :  { %464 = vmatmul.mubr.msk.bf16.gmra.mxu0 %vm118_vm0, %v490_v8  ;;  %472 = vmatmul.mubr.msk.bf16.gmra.mxu1 %vm118_vm0, %v490_v8 }
  0x1f   :  { %215 = vmatprep.mubr.bf16.mxu0 %v517_v2  ;;  %328 = vmatprep.mubr.bf16.mxu1 %v517_v2 }
  0x26   :  { %465 = vmatmul.mubr.msk.bf16.gmra.mxu0 %vm118_vm0, %v491_v9  ;;  %473 = vmatmul.mubr.msk.bf16.gmra.mxu1 %vm118_vm0, %v491_v9 }
  0x27   :  { %225 = vmatprep.mubr.bf16.mxu0 %v517_v2  ;;  %338 = vmatprep.mubr.bf16.mxu1 %v517_v2 }
  0x2e   :  { %466 = vmatmul.mubr.msk.bf16.gmra.mxu0 %vm118_vm0, %v492_v10  ;;  %474 = vmatmul.mubr.msk.bf16.gmra.mxu1 %vm118_vm0, %v492_v10 }
  0x2f   :  { %235 = vmatprep.mubr.bf16.mxu0 %v517_v2  ;;  %348 = vmatprep.mubr.bf16.mxu1 %v517_v2 }
  0x36   :  { %467 = vmatmul.mubr.msk.bf16.gmra.mxu0 %vm118_vm0, %v493_v11  ;;  %475 = vmatmul.mubr.msk.bf16.gmra.mxu1 %vm118_vm0, %v493_v11 }
  0x37   :  { %245 = vmatprep.mubr.bf16.mxu0 %v517_v2  ;;  %358 = vmatprep.mubr.bf16.mxu1 %v517_v2 }
  0x3e   :  { %468 = vmatmul.mubr.msk.bf16.gmra.mxu0 %vm118_vm0, %v494_v12  ;;  %476 = vmatmul.mubr.msk.bf16.gmra.mxu1 %vm118_vm0, %v494_v12 }
  0xc6   :  { %v177_v24 = vpop.f32.mrf.mxu0  ;;  %v290_v25 = vpop.f32.mrf.mxu1 }
  0xc7   :  { %v178_v26 = vadd.f32 %v177_v24, %v596_v20  ;;  %v291_v27 = vadd.f32 %v290_v25, %v598_v21 }
  0xc8   :  { %v179_v28 = vpop.f32.mrf.mxu0  ;;  %v292_v29 = vpop.f32.mrf.mxu1 }
  0xc9   :  { %369 = vst [vmem:[#allocation2] sm:$0xff] %v178_v26  ;;  %371 = vst [vmem:[#allocation2 + $0x10] sm:$0xff] %v291_v27  ;;  %v180_v30 = vadd.f32 %v179_v28, %v600_v22  ;;  %v293_v31 = vadd.f32 %v292_v29, %v602_v23 }
  0xca   :  { %v181_v32 = vpop.f32.mrf.mxu0  ;;  %v294_v33 = vpop.f32.mrf.mxu1 }
  0xcb   :  { %370 = vst [vmem:[#allocation2 + $0x8] sm:$0xff] %v180_v30  ;;  %372 = vst [vmem:[#allocation2 + $0x18] sm:$0xff] %v293_v31  ;;  %v182_v34 = vadd.f32 %v181_v32, %v596_v20  ;;  %v295_v35 = vadd.f32 %v294_v33, %v598_v21 }
  0xcc   :  { %v183_v36 = vpop.f32.mrf.mxu0  ;;  %v296_v37 = vpop.f32.mrf.mxu1 }
  0xcd   :  { %373 = vst [vmem:[#allocation2 + $0x20] sm:$0xff] %v182_v34  ;;  %375 = vst [vmem:[#allocation2 + $0x30] sm:$0xff] %v295_v35  ;;  %v184_v38 = vadd.f32 %v183_v36, %v600_v22  ;;  %v297_v39 = vadd.f32 %v296_v37, %v602_v23 }
  0xce   :  { %v187_v40 = vpop.f32.mrf.mxu0  ;;  %v300_v41 = vpop.f32.mrf.mxu1 }
  0xcf   :  { %374 = vst [vmem:[#allocation2 + $0x28] sm:$0xff] %v184_v38  ;;  %376 = vst [vmem:[#allocation2 + $0x38] sm:$0xff] %v297_v39  ;;  %v188_v42 = vadd.f32 %v187_v40, %v596_v20  ;;  %v301_v43 = vadd.f32 %v300_v41, %v598_v21 }
  0xd0   :  { %v189_v44 = vpop.f32.mrf.mxu0  ;;  %v302_v45 = vpop.f32.mrf.mxu1 }
  0xd1   :  { %377 = vst [vmem:[#allocation2 + $0x40] sm:$0xff] %v188_v42  ;;  %379 = vst [vmem:[#allocation2 + $0x50] sm:$0xff] %v301_v43  ;;  %v190_v46 = vadd.f32 %v189_v44, %v600_v22  ;;  %v303_v47 = vadd.f32 %v302_v45, %v602_v23 }
  0xd2   :  { %v191_v48 = vpop.f32.mrf.mxu0  ;;  %v304_v49 = vpop.f32.mrf.mxu1 }
  0xd3   :  { %378 = vst [vmem:[#allocation2 + $0x48] sm:$0xff] %v190_v46  ;;  %380 = vst [vmem:[#allocation2 + $0x58] sm:$0xff] %v303_v47  ;;  %v192_v50 = vadd.f32 %v191_v48, %v596_v20  ;;  %v305_v51 = vadd.f32 %v304_v49, %v598_v21 }
  0xd4   :  { %v193_v52 = vpop.f32.mrf.mxu0  ;;  %v306_v53 = vpop.f32.mrf.mxu1 }
  0xd5   :  { %381 = vst [vmem:[#allocation2 + $0x60] sm:$0xff] %v192_v50  ;;  %383 = vst [vmem:[#allocation2 + $0x70] sm:$0xff] %v305_v51  ;;  %v194_v54 = vadd.f32 %v193_v52, %v600_v22  ;;  %v307_v55 = vadd.f32 %v306_v53, %v602_v23 }
  0xd6   :  { %v197_v56 = vpop.f32.mrf.mxu0  ;;  %v310_v57 = vpop.f32.mrf.mxu1 }
  0xd7   :  { %382 = vst [vmem:[#allocation2 + $0x68] sm:$0xff] %v194_v54  ;;  %384 = vst [vmem:[#allocation2 + $0x78] sm:$0xff] %v307_v55  ;;  %v198_v58 = vadd.f32 %v197_v56, %v596_v20  ;;  %v311_v59 = vadd.f32 %v310_v57, %v598_v21 }
  0xd8   :  { %v199_v60 = vpop.f32.mrf.mxu0  ;;  %v312_v61 = vpop.f32.mrf.mxu1 }
  0xd9   :  { %385 = vst [vmem:[#allocation2 + $0x80] sm:$0xff] %v198_v58  ;;  %387 = vst [vmem:[#allocation2 + $0x90] sm:$0xff] %v311_v59  ;;  %v200_v62 = vadd.f32 %v199_v60, %v600_v22  ;;  %v313_v63 = vadd.f32 %v312_v61, %v602_v23 }
  0xda   :  { %v201_v0 = vpop.f32.mrf.mxu0  ;;  %v314_v1 = vpop.f32.mrf.mxu1 }
  0xdb   :  { %386 = vst [vmem:[#allocation2 + $0x88] sm:$0xff] %v200_v62  ;;  %388 = vst [vmem:[#allocation2 + $0x98] sm:$0xff] %v313_v63  ;;  %v202_v2 = vadd.f32 %v201_v0, %v596_v20  ;;  %v315_v3 = vadd.f32 %v314_v1, %v598_v21 }
  0xdc   :  { %v203_v4 = vpop.f32.mrf.mxu0  ;;  %v316_v5 = vpop.f32.mrf.mxu1 }
  0xdd   :  { %389 = vst [vmem:[#allocation2 + $0xa0] sm:$0xff] %v202_v2  ;;  %391 = vst [vmem:[#allocation2 + $0xb0] sm:$0xff] %v315_v3  ;;  %v204_v6 = vadd.f32 %v203_v4, %v600_v22  ;;  %v317_v7 = vadd.f32 %v316_v5, %v602_v23 }
  0xde   :  { %v207_v8 = vpop.f32.mrf.mxu0  ;;  %v320_v9 = vpop.f32.mrf.mxu1 }
  0xdf   :  { %390 = vst [vmem:[#allocation2 + $0xa8] sm:$0xff] %v204_v6  ;;  %392 = vst [vmem:[#allocation2 + $0xb8] sm:$0xff] %v317_v7  ;;  %v208_v10 = vadd.f32 %v207_v8, %v596_v20  ;;  %v321_v11 = vadd.f32 %v320_v9, %v598_v21 }
  0xe0   :  { %v209_v12 = vpop.f32.mrf.mxu0  ;;  %v322_v13 = vpop.f32.mrf.mxu1 }
  0xe1   :  { %393 = vst [vmem:[#allocation2 + $0xc0] sm:$0xff] %v208_v10  ;;  %395 = vst [vmem:[#allocation2 + $0xd0] sm:$0xff] %v321_v11  ;;  %v210_v14 = vadd.f32 %v209_v12, %v600_v22  ;;  %v323_v15 = vadd.f32 %v322_v13, %v602_v23 }
  0xe2   :  { %v211_v16 = vpop.f32.mrf.mxu0  ;;  %v324_v17 = vpop.f32.mrf.mxu1 }
  0xe3   :  { %394 = vst [vmem:[#allocation2 + $0xc8] sm:$0xff] %v210_v14  ;;  %396 = vst [vmem:[#allocation2 + $0xd8] sm:$0xff] %v323_v15  ;;  %v212_v18 = vadd.f32 %v211_v16, %v596_v20  ;;  %v325_v19 = vadd.f32 %v324_v17, %v598_v21 }
  0xe4   :  { %v213_v24 = vpop.f32.mrf.mxu0  ;;  %v326_v25 = vpop.f32.mrf.mxu1 }
  0xe5   :  { %397 = vst [vmem:[#allocation2 + $0xe0] sm:$0xff] %v212_v18  ;;  %399 = vst [vmem:[#allocation2 + $0xf0] sm:$0xff] %v325_v19  ;;  %v214_v26 = vadd.f32 %v213_v24, %v600_v22  ;;  %v327_v27 = vadd.f32 %v326_v25, %v602_v23 }
  0xe6   :  { %v217_v28 = vpop.f32.mrf.mxu0  ;;  %v330_v29 = vpop.f32.mrf.mxu1 }
  0xe7   :  { %398 = vst [vmem:[#allocation2 + $0xe8] sm:$0xff] %v214_v26  ;;  %400 = vst [vmem:[#allocation2 + $0xf8] sm:$0xff] %v327_v27  ;;  %v218_v30 = vadd.f32 %v217_v28, %v596_v20  ;;  %v331_v31 = vadd.f32 %v330_v29, %v598_v21 }
  0xe8   :  { %v219_v32 = vpop.f32.mrf.mxu0  ;;  %v332_v33 = vpop.f32.mrf.mxu1 }
  0xe9   :  { %401 = vst [vmem:[#allocation2 + $0x100] sm:$0xff] %v218_v30  ;;  %403 = vst [vmem:[#allocation2 + $0x110] sm:$0xff] %v331_v31  ;;  %v220_v34 = vadd.f32 %v219_v32, %v600_v22  ;;  %v333_v35 = vadd.f32 %v332_v33, %v602_v23 }
  0xea   :  { %v221_v36 = vpop.f32.mrf.mxu0  ;;  %v334_v37 = vpop.f32.mrf.mxu1 }
  0xeb   :  { %402 = vst [vmem:[#allocation2 + $0x108] sm:$0xff] %v220_v34  ;;  %404 = vst [vmem:[#allocation2 + $0x118] sm:$0xff] %v333_v35  ;;  %v222_v38 = vadd.f32 %v221_v36, %v596_v20  ;;  %v335_v39 = vadd.f32 %v334_v37, %v598_v21 }
  0xec   :  { %v223_v40 = vpop.f32.mrf.mxu0  ;;  %v336_v41 = vpop.f32.mrf.mxu1 }
  0xed   :  { %405 = vst [vmem:[#allocation2 + $0x120] sm:$0xff] %v222_v38  ;;  %407 = vst [vmem:[#allocation2 + $0x130] sm:$0xff] %v335_v39  ;;  %v224_v42 = vadd.f32 %v223_v40, %v600_v22  ;;  %v337_v43 = vadd.f32 %v336_v41, %v602_v23 }
  0xee   :  { %v227_v44 = vpop.f32.mrf.mxu0  ;;  %v340_v45 = vpop.f32.mrf.mxu1 }
  0xef   :  { %406 = vst [vmem:[#allocation2 + $0x128] sm:$0xff] %v224_v42  ;;  %408 = vst [vmem:[#allocation2 + $0x138] sm:$0xff] %v337_v43  ;;  %v228_v46 = vadd.f32 %v227_v44, %v596_v20  ;;  %v341_v47 = vadd.f32 %v340_v45, %v598_v21 }
  0xf0   :  { %v229_v48 = vpop.f32.mrf.mxu0  ;;  %v342_v49 = vpop.f32.mrf.mxu1 }
  0xf1   :  { %409 = vst [vmem:[#allocation2 + $0x140] sm:$0xff] %v228_v46  ;;  %411 = vst [vmem:[#allocation2 + $0x150] sm:$0xff] %v341_v47  ;;  %v230_v50 = vadd.f32 %v229_v48, %v600_v22  ;;  %v343_v51 = vadd.f32 %v342_v49, %v602_v23 }
  0xf2   :  { %v231_v52 = vpop.f32.mrf.mxu0  ;;  %v344_v53 = vpop.f32.mrf.mxu1 }
  0xf3   :  { %410 = vst [vmem:[#allocation2 + $0x148] sm:$0xff] %v230_v50  ;;  %412 = vst [vmem:[#allocation2 + $0x158] sm:$0xff] %v343_v51  ;;  %v232_v54 = vadd.f32 %v231_v52, %v596_v20  ;;  %v345_v55 = vadd.f32 %v344_v53, %v598_v21 }
  0xf4   :  { %v233_v56 = vpop.f32.mrf.mxu0  ;;  %v346_v57 = vpop.f32.mrf.mxu1 }
  0xf5   :  { %413 = vst [vmem:[#allocation2 + $0x160] sm:$0xff] %v232_v54  ;;  %415 = vst [vmem:[#allocation2 + $0x170] sm:$0xff] %v345_v55  ;;  %v234_v58 = vadd.f32 %v233_v56, %v600_v22  ;;  %v347_v59 = vadd.f32 %v346_v57, %v602_v23 }
  0xf6   :  { %v237_v60 = vpop.f32.mrf.mxu0  ;;  %v350_v61 = vpop.f32.mrf.mxu1 }
  0xf7   :  { %414 = vst [vmem:[#allocation2 + $0x168] sm:$0xff] %v234_v58  ;;  %416 = vst [vmem:[#allocation2 + $0x178] sm:$0xff] %v347_v59  ;;  %v238_v62 = vadd.f32 %v237_v60, %v596_v20  ;;  %v351_v63 = vadd.f32 %v350_v61, %v598_v21 }
  0xf8   :  { %v239_v0 = vpop.f32.mrf.mxu0  ;;  %v352_v1 = vpop.f32.mrf.mxu1 }
  0xf9   :  { %417 = vst [vmem:[#allocation2 + $0x180] sm:$0xff] %v238_v62  ;;  %419 = vst [vmem:[#allocation2 + $0x190] sm:$0xff] %v351_v63  ;;  %v240_v2 = vadd.f32 %v239_v0, %v600_v22  ;;  %v353_v3 = vadd.f32 %v352_v1, %v602_v23 }
  0xfa   :  { %v241_v4 = vpop.f32.mrf.mxu0  ;;  %v354_v5 = vpop.f32.mrf.mxu1 }
  0xfb   :  { %418 = vst [vmem:[#allocation2 + $0x188] sm:$0xff] %v240_v2  ;;  %420 = vst [vmem:[#allocation2 + $0x198] sm:$0xff] %v353_v3  ;;  %v242_v6 = vadd.f32 %v241_v4, %v596_v20  ;;  %v355_v7 = vadd.f32 %v354_v5, %v598_v21 }
  0xfc   :  { %v243_v8 = vpop.f32.mrf.mxu0  ;;  %v356_v9 = vpop.f32.mrf.mxu1 }
  0xfd   :  { %421 = vst [vmem:[#allocation2 + $0x1a0] sm:$0xff] %v242_v6  ;;  %423 = vst [vmem:[#allocation2 + $0x1b0] sm:$0xff] %v355_v7  ;;  %v244_v10 = vadd.f32 %v243_v8, %v600_v22  ;;  %v357_v11 = vadd.f32 %v356_v9, %v602_v23 }
  0xfe   :  { %v247_v12 = vpop.f32.mrf.mxu0  ;;  %v360_v13 = vpop.f32.mrf.mxu1 }
  0xff   :  { %422 = vst [vmem:[#allocation2 + $0x1a8] sm:$0xff] %v244_v10  ;;  %424 = vst [vmem:[#allocation2 + $0x1b8] sm:$0xff] %v357_v11  ;;  %v248_v14 = vadd.f32 %v247_v12, %v596_v20  ;;  %v361_v15 = vadd.f32 %v360_v13, %v598_v21 }
 0x100   :  { %v249_v16 = vpop.f32.mrf.mxu0  ;;  %v362_v17 = vpop.f32.mrf.mxu1 }
 0x101   :  { %425 = vst [vmem:[#allocation2 + $0x1c0] sm:$0xff] %v248_v14  ;;  %427 = vst [vmem:[#allocation2 + $0x1d0] sm:$0xff] %v361_v15  ;;  %v250_v18 = vadd.f32 %v249_v16, %v600_v22  ;;  %v363_v19 = vadd.f32 %v362_v17, %v602_v23 }
 0x102   :  { %v251_v24 = vpop.f32.mrf.mxu0  ;;  %v364_v25 = vpop.f32.mrf.mxu1 }
 0x103   :  { %426 = vst [vmem:[#allocation2 + $0x1c8] sm:$0xff] %v250_v18  ;;  %428 = vst [vmem:[#allocation2 + $0x1d8] sm:$0xff] %v363_v19  ;;  %v252_v26 = vadd.f32 %v251_v24, %v596_v20  ;;  %v365_v27 = vadd.f32 %v364_v25, %v598_v21 }
 0x104   :  { %v253_v28 = vpop.f32.mrf.mxu0  ;;  %v366_v29 = vpop.f32.mrf.mxu1 }
 0x105   :  { %429 = vst [vmem:[#allocation2 + $0x1e0] sm:$0xff] %v252_v26  ;;  %431 = vst [vmem:[#allocation2 + $0x1f0] sm:$0xff] %v365_v27  ;;  %v254_v30 = vadd.f32 %v253_v28, %v600_v22  ;;  %v367_v31 = vadd.f32 %v366_v29, %v602_v23 }
 0x107   :  { %430 = vst [vmem:[#allocation2 + $0x1e8] sm:$0xff] %v254_v30  ;;  %432 = vst [vmem:[#allocation2 + $0x1f8] sm:$0xff] %v367_v31 }
 0x108   :  { %506 = shalt.err (!%p503_p4)
}
 0x109   :  { %s519_s11 = smov 512   ;;  %s520_s12 = smov 32  }
 0x10a   :  { %444 = dma.vmem_to_hbm [thread:$0]  %s439_s2, 8192, %s674_s3, [#allocation3], %s519_s11, %s519_s11, %s520_s12  }
 0x10b   :  { %515 = dma.done.wait [#allocation3], 8192  }
 0x10c   :  { %516 = vsyncadd [#allocation3], 4294959104 }
 0x10d   :  { %448 = vsyncpa [#allocation3], 1 }

</bundles_post_ra>
